<compile_context>
chip_gen: v6e
topology: v6e:2x2x1
jax: 0.10.0
libtpu: 0.0.40
codegen_flags: <defaults>
</compile_context>

<pallas_src>
import jax
import jax.numpy as jnp
from jax.experimental import pallas as pl
from jax.experimental.pallas import tpu as pltpu


def _round_up(x, m):
    return ((x + m - 1) // m) * m


def sae_kernel(x_ref, we_ref, be_ref, wd_ref, bd_ref, enc_ref, dec_ref, acc_ref):
    # Grid point (i, h):
    #   x_ref:   (tm, D)   batch tile of input activations (resident across h)
    #   we_ref:  (D, th)   encoder weight tile (columns h*th : (h+1)*th)
    #   be_ref:  (1, th)   encoder bias tile
    #   wd_ref:  (th, D)   decoder weight tile (rows    h*th : (h+1)*th)
    #   bd_ref:  (1, D)    decoder bias (resident)
    #   enc_ref: (tm, th)  encoded output slab (written every h step)
    #   dec_ref: (tm, D)   decoded output (resident across h, written on last h)
    #   acc_ref: (tm, D)   f32 decoder accumulator scratch
    h = pl.program_id(1)

    @pl.when(h == 0)
    def _init():
        acc_ref[...] = jnp.zeros_like(acc_ref)

    x = x_ref[...]
    # Encoder: f32 accumulation on the MXU; bias + ReLU ride free VPU slots.
    enc = jnp.dot(x, we_ref[...], preferred_element_type=jnp.float32)
    enc = jnp.maximum(enc + be_ref[...], 0.0)
    enc_ref[...] = enc.astype(enc_ref.dtype)

    # Decoder partial product for this hidden tile, accumulated in f32.
    acc_ref[...] += jnp.dot(enc.astype(wd_ref.dtype), wd_ref[...],
                            preferred_element_type=jnp.float32)

    @pl.when(h == pl.num_programs(1) - 1)
    def _finalize():
        dec_ref[...] = (acc_ref[...] + bd_ref[...]).astype(dec_ref.dtype)


def sparse_autoencoder_forward(x, w_enc_t, b_enc, w_dec_t, b_dec, *,
                               tm=256, th=512, compute_dtype=None,
                               out_dtype=None):
    """Fused SAE forward.

    Returns (encoded, decoded) = (relu(x @ We + be), encoded @ Wd + bd).

    x        : (N, D)   activation vectors
    w_enc_t  : (D, H)   encoder weight (pre-transposed, i.e. encoder.weight.T)
    b_enc    : (H,)
    w_dec_t  : (H, D)   decoder weight (pre-transposed, i.e. decoder.weight.T)
    b_dec    : (D,)
    tm       : batch tile (>=128 recommended on real workloads; 256+ on v6e/v7x)
    th       : hidden-dim tile (multiple of 128; 256/512 recommended)
    compute_dtype : optional operand dtype for the matmuls (e.g. jnp.bfloat16);
                    accumulation, bias add and ReLU stay in f32.
    """
    N, D = x.shape
    H = w_enc_t.shape[1]
    out_dtype = x.dtype if out_dtype is None else out_dtype

    if compute_dtype is not None:
        x = x.astype(compute_dtype)
        w_enc_t = w_enc_t.astype(compute_dtype)
        w_dec_t = w_dec_t.astype(compute_dtype)

    # Biases stay in f32 and are added after the f32 MXU accumulation.
    b_enc_f = b_enc.astype(jnp.float32)
    b_dec_f = b_dec.astype(jnp.float32).reshape(1, D)

    # ---- tile sizing + zero padding ----
    tm = max(8, min(tm, _round_up(N, 8)))
    Np = _round_up(N, tm)
    th = max(128, min(th, _round_up(H, 128)))
    Hp = _round_up(H, th)

    if Np != N:
        x = jnp.pad(x, ((0, Np - N), (0, 0)))
    if Hp != H:
        w_enc_t = jnp.pad(w_enc_t, ((0, 0), (0, Hp - H)))
        b_enc_f = jnp.pad(b_enc_f, ((0, Hp - H),))
        w_dec_t = jnp.pad(w_dec_t, ((0, Hp - H), (0, 0)))
    b_enc_f = b_enc_f.reshape(1, Hp)

    grid = (Np // tm, Hp // th)

    op_isize = jnp.dtype(x.dtype).itemsize
    out_isize = jnp.dtype(out_dtype).itemsize

    # Advisory cost estimate for XLA's scheduler.
    flops = 4 * Np * D * Hp  # encoder + decoder matmuls
    bytes_accessed = (x.size * x.dtype.itemsize
                      + w_enc_t.size * w_enc_t.dtype.itemsize
                      + w_dec_t.size * w_dec_t.dtype.itemsize
                      + b_enc_f.size * 4 + b_dec_f.size * 4
                      + Np * Hp * out_isize + Np * D * out_isize)

    # Scoped-VMEM budget derived from the actual double-buffered tile set;
    # clamp to 64 MiB so it stays within physical VMEM on v7x as well.
    vmem_est = (2 * (tm * D + D * th + th + th * D + D) * op_isize   # inputs
                + 2 * (tm * th + tm * D) * out_isize                 # outputs
                + tm * D * 4)                                        # f32 acc
    vmem_limit = int(min(64 << 20, max(32 << 20, int(vmem_est * 1.2) + (2 << 20))))

    enc, dec = pl.pallas_call(
        sae_kernel,
        out_shape=(
            jax.ShapeDtypeStruct((Np, Hp), out_dtype),   # encoded
            jax.ShapeDtypeStruct((Np, D), out_dtype),    # decoded
        ),
        grid_spec=pltpu.PrefetchScalarGridSpec(
            num_scalar_prefetch=0,
            grid=grid,
            in_specs=[
                pl.BlockSpec((tm, D), lambda i, h: (i, 0)),   # x batch tile
                pl.BlockSpec((D, th), lambda i, h: (0, h)),   # encoder weight tile
                pl.BlockSpec((1, th), lambda i, h: (0, h)),   # encoder bias tile
                pl.BlockSpec((th, D), lambda i, h: (h, 0)),   # decoder weight tile
                pl.BlockSpec((1, D), lambda i, h: (0, 0)),    # decoder bias
            ],
            out_specs=[
                pl.BlockSpec((tm, th), lambda i, h: (i, h)),  # encoded slab
                pl.BlockSpec((tm, D), lambda i, h: (i, 0)),   # decoded (resident over h)
            ],
            scratch_shapes=[pltpu.VMEM((tm, D), jnp.float32)],  # f32 decoder accumulator
        ),
        compiler_params=pltpu.CompilerParams(
            # Batch tiles are independent -> parallel (v7x: split across 2 TCs).
            # Hidden axis is the decoder K-reduction -> arbitrary, placed last.
            dimension_semantics=("parallel", "arbitrary"),
            vmem_limit_bytes=vmem_limit,
        ),
        cost_estimate=pl.CostEstimate(flops=flops, transcendentals=0,
                                      bytes_accessed=bytes_accessed),
    )(x, w_enc_t, b_enc_f, w_dec_t, b_dec_f)

    return enc[:N, :H], dec[:N, :]


if __name__ == "__main__":
    # Small synthetic shapes consistent with the module:
    #   x: [batch, input_dim] activation vectors, encoder -> hidden_dim.
    N = 16
    input_dim = 256
    hidden_dim = 256

    key = jax.random.PRNGKey(0)
    kx, kwe, kbe, kwd, kbd = jax.random.split(key, 5)

    x = jax.random.normal(kx, (N, input_dim), dtype=jnp.float32)
    # Deterministic "nn.Linear"-style params (uniform in +/- 1/sqrt(fan_in)),
    # stored pre-transposed for the kernel.
    lim_e = 1.0 / (input_dim ** 0.5)
    lim_d = 1.0 / (hidden_dim ** 0.5)
    w_enc_t = jax.random.uniform(kwe, (input_dim, hidden_dim),
                                 minval=-lim_e, maxval=lim_e, dtype=jnp.float32)
    b_enc = jax.random.uniform(kbe, (hidden_dim,),
                               minval=-lim_e, maxval=lim_e, dtype=jnp.float32)
    w_dec_t = jax.random.uniform(kwd, (hidden_dim, input_dim),
                                 minval=-lim_d, maxval=lim_d, dtype=jnp.float32)
    b_dec = jax.random.uniform(kbd, (input_dim,),
                               minval=-lim_d, maxval=lim_d, dtype=jnp.float32)

    # Pure-JAX reference.
    enc_ref = jnp.maximum(x @ w_enc_t + b_enc, 0.0)
    dec_ref = enc_ref @ w_dec_t + b_dec

    # 1) f32 path: tight tolerance.
    enc, dec = sparse_autoencoder_forward(x, w_enc_t, b_enc, w_dec_t, b_dec)
    jax.block_until_ready((enc, dec))
    assert jnp.allclose(enc, enc_ref, atol=1e-5, rtol=1e-5)
    assert jnp.allclose(dec, dec_ref, atol=1e-5, rtol=1e-5)

    # 2) bf16-operand path (production setting): loose tolerance.
    enc_bf, dec_bf = sparse_autoencoder_forward(
        x, w_enc_t, b_enc, w_dec_t, b_dec, compute_dtype=jnp.bfloat16)
    jax.block_until_ready((enc_bf, dec_bf))
    assert jnp.allclose(enc_bf, enc_ref, atol=1e-1, rtol=1e-1)
    assert jnp.allclose(dec_bf, dec_ref, atol=1e-1, rtol=1e-1)

    # 3) irregular shapes exercise the padding path (N % 8 != 0, H % 128 != 0).
    N2, H2 = 13, 200
    x2 = jax.random.normal(kx, (N2, input_dim), dtype=jnp.float32)
    we2 = w_enc_t[:, :H2]
    be2 = b_enc[:H2]
    wd2 = w_dec_t[:H2, :]
    enc2, dec2 = sparse_autoencoder_forward(x2, we2, be2, wd2, b_dec)
    jax.block_until_ready((enc2, dec2))
    enc2_ref = jnp.maximum(x2 @ we2 + be2, 0.0)
    dec2_ref = enc2_ref @ wd2 + b_dec
    assert jnp.allclose(enc2, enc2_ref, atol=1e-5, rtol=1e-5)
    assert jnp.allclose(dec2, dec2_ref, atol=1e-5, rtol=1e-5)

    # TODO(synk): sparsity_loss (KL penalty over mean activation) is a
    # training-time scalar reduction, not part of forward(); keep in plain JAX.
    # TODO(synk): activation collection from gemma-2-2b (HF forward hooks) is
    # host-side data prep, not a kernel; inputs here are synthetic activations.
    print("KERNEL_OK")
</pallas_src>

<mosaic_0001>
module attributes {stable_mosaic.version = 11 : i64} {
  func.func @sae_kernel(%arg0: i32, %arg1: i32, %arg2: memref<16x256xf32, #tpu.memory_space<vmem>>, %arg3: memref<256x256xf32, #tpu.memory_space<vmem>>, %arg4: memref<1x256xf32, #tpu.memory_space<vmem>>, %arg5: memref<256x256xf32, #tpu.memory_space<vmem>>, %arg6: memref<1x256xf32, #tpu.memory_space<vmem>>, %arg7: memref<16x256xf32, #tpu.memory_space<vmem>>, %arg8: memref<16x256xf32, #tpu.memory_space<vmem>>, %arg9: memref<16x256xf32, #tpu.memory_space<vmem>>) attributes {dimension_semantics = [#tpu.dimension_semantics<parallel>, #tpu.dimension_semantics<arbitrary>], iteration_bounds = array<i64: 1, 1>, scalar_prefetch = 0 : i64, scratch_operands = 1 : i64, tpu.core_type = #tpu.core_type<tc>, window_params = [{transform_indices = @transform_0, window_bounds = array<i64: 16, 256>}, {transform_indices = @transform_1, window_bounds = array<i64: 256, 256>}, {transform_indices = @transform_2, window_bounds = array<i64: 1, 256>}, {transform_indices = @transform_3, window_bounds = array<i64: 256, 256>}, {pipeline_mode = #tpu.pipeline_mode<synchronous>, transform_indices = @transform_4, window_bounds = array<i64: 1, 256>}, {transform_indices = @transform_5, window_bounds = array<i64: 16, 256>}, {transform_indices = @transform_6, window_bounds = array<i64: 16, 256>}]} {
    %c0_i32 = arith.constant 0 : i32
    %0 = arith.cmpi eq, %arg1, %c0_i32 : i32
    %1 = arith.extui %0 : i1 to i32
    %c0_i32_0 = arith.constant 0 : i32
    %2 = arith.cmpi ne, %1, %c0_i32_0 : i32
    scf.if %2 {
      %cst_18 = arith.constant 0.000000e+00 : f32
      %20 = vector.broadcast %cst_18 : f32 to vector<16x256xf32>
      %c0_19 = arith.constant 0 : index
      %c0_20 = arith.constant 0 : index
      %21 = vector.load %arg9[%c0_19, %c0_20] : memref<16x256xf32, #tpu.memory_space<vmem>>, vector<16x256xf32>
      tpu.vector_store %arg9[%c0_19, %c0_20], %20 {strides = array<i32>} : memref<16x256xf32, #tpu.memory_space<vmem>>, vector<16x256xf32>,
    } else {
    }
    %c0 = arith.constant 0 : index
    %c0_1 = arith.constant 0 : index
    %3 = vector.load %arg2[%c0, %c0_1] : memref<16x256xf32, #tpu.memory_space<vmem>>, vector<16x256xf32>
    %c0_2 = arith.constant 0 : index
    %c0_3 = arith.constant 0 : index
    %4 = vector.load %arg3[%c0_2, %c0_3] : memref<256x256xf32, #tpu.memory_space<vmem>>, vector<256x256xf32>
    %cst = arith.constant dense<0.000000e+00> : vector<16x256xf32>
    %5 = tpu.matmul %3, %4, %cst {dimension_numbers = #tpu.dot_dimension_numbers<[1], [0], [0], [1], [0, 0, 1, 1], [], []>} : vector<16x256xf32>, vector<256x256xf32>, vector<16x256xf32> -> vector<16x256xf32>
    %c0_4 = arith.constant 0 : index
    %c0_5 = arith.constant 0 : index
    %6 = vector.load %arg4[%c0_4, %c0_5] : memref<1x256xf32, #tpu.memory_space<vmem>>, vector<1x256xf32>
    %7 = vector.broadcast %6 : vector<1x256xf32> to vector<16x256xf32>
    %8 = arith.addf %5, %7 : vector<16x256xf32>
    %cst_6 = arith.constant 0.000000e+00 : f32
    %9 = vector.broadcast %cst_6 : f32 to vector<16x256xf32>
    %10 = arith.maximumf %8, %9 : vector<16x256xf32>
    %c0_7 = arith.constant 0 : index
    %c0_8 = arith.constant 0 : index
    %11 = vector.load %arg7[%c0_7, %c0_8] : memref<16x256xf32, #tpu.memory_space<vmem>>, vector<16x256xf32>
    tpu.vector_store %arg7[%c0_7, %c0_8], %10 {strides = array<i32>} : memref<16x256xf32, #tpu.memory_space<vmem>>, vector<16x256xf32>,
    %c0_9 = arith.constant 0 : index
    %c0_10 = arith.constant 0 : index
    %12 = vector.load %arg9[%c0_9, %c0_10] : memref<16x256xf32, #tpu.memory_space<vmem>>, vector<16x256xf32>
    %c0_11 = arith.constant 0 : index
    %c0_12 = arith.constant 0 : index
    %13 = vector.load %arg5[%c0_11, %c0_12] : memref<256x256xf32, #tpu.memory_space<vmem>>, vector<256x256xf32>
    %cst_13 = arith.constant dense<0.000000e+00> : vector<16x256xf32>
    %14 = tpu.matmul %10, %13, %cst_13 {dimension_numbers = #tpu.dot_dimension_numbers<[1], [0], [0], [1], [0, 0, 1, 1], [], []>} : vector<16x256xf32>, vector<256x256xf32>, vector<16x256xf32> -> vector<16x256xf32>
    %15 = arith.addf %12, %14 : vector<16x256xf32>
    %c0_14 = arith.constant 0 : index
    %c0_15 = arith.constant 0 : index
    %16 = vector.load %arg9[%c0_14, %c0_15] : memref<16x256xf32, #tpu.memory_space<vmem>>, vector<16x256xf32>
    tpu.vector_store %arg9[%c0_14, %c0_15], %15 {strides = array<i32>} : memref<16x256xf32, #tpu.memory_space<vmem>>, vector<16x256xf32>,
    %c0_i32_16 = arith.constant 0 : i32
    %17 = arith.cmpi eq, %arg1, %c0_i32_16 : i32
    %18 = arith.extui %17 : i1 to i32
    %c0_i32_17 = arith.constant 0 : i32
    %19 = arith.cmpi ne, %18, %c0_i32_17 : i32
    scf.if %19 {
      %c0_18 = arith.constant 0 : index
      %c0_19 = arith.constant 0 : index
      %20 = vector.load %arg9[%c0_18, %c0_19] : memref<16x256xf32, #tpu.memory_space<vmem>>, vector<16x256xf32>
      %c0_20 = arith.constant 0 : index
      %c0_21 = arith.constant 0 : index
      %21 = vector.load %arg6[%c0_20, %c0_21] : memref<1x256xf32, #tpu.memory_space<vmem>>, vector<1x256xf32>
      %22 = vector.broadcast %21 : vector<1x256xf32> to vector<16x256xf32>
      %23 = arith.addf %20, %22 : vector<16x256xf32>
      %c0_22 = arith.constant 0 : index
      %c0_23 = arith.constant 0 : index
      %24 = vector.load %arg8[%c0_22, %c0_23] : memref<16x256xf32, #tpu.memory_space<vmem>>, vector<16x256xf32>
      tpu.vector_store %arg8[%c0_22, %c0_23], %23 {strides = array<i32>} : memref<16x256xf32, #tpu.memory_space<vmem>>, vector<16x256xf32>,
    } else {
    }
    return
  }
  func.func @transform_0(%arg0: i32, %arg1: i32) -> (i32, i32) {
    %c0_i32 = arith.constant 0 : i32
    %c0_i32_0 = arith.constant 0 : i32
    return %arg0, %c0_i32 : i32, i32
  }
  func.func @transform_1(%arg0: i32, %arg1: i32) -> (i32, i32) {
    %c0_i32 = arith.constant 0 : i32
    %c0_i32_0 = arith.constant 0 : i32
    return %c0_i32, %arg1 : i32, i32
  }
  func.func @transform_2(%arg0: i32, %arg1: i32) -> (i32, i32) {
    %c0_i32 = arith.constant 0 : i32
    %c0_i32_0 = arith.constant 0 : i32
    return %c0_i32, %arg1 : i32, i32
  }
  func.func @transform_3(%arg0: i32, %arg1: i32) -> (i32, i32) {
    %c0_i32 = arith.constant 0 : i32
    %c0_i32_0 = arith.constant 0 : i32
    return %arg1, %c0_i32 : i32, i32
  }
  func.func @transform_4(%arg0: i32, %arg1: i32) -> (i32, i32) {
    %c0_i32 = arith.constant 0 : i32
    %c0_i32_0 = arith.constant 0 : i32
    %c0_i32_1 = arith.constant 0 : i32
    return %c0_i32, %c0_i32_0 : i32, i32
  }
  func.func @transform_5(%arg0: i32, %arg1: i32) -> (i32, i32) {
    %c0_i32 = arith.constant 0 : i32
    return %arg0, %arg1 : i32, i32
  }
  func.func @transform_6(%arg0: i32, %arg1: i32) -> (i32, i32) {
    %c0_i32 = arith.constant 0 : i32
    %c0_i32_0 = arith.constant 0 : i32
    return %arg0, %c0_i32 : i32, i32
  }
}

</mosaic_0001>

<bundles_post_ra>
// kernel: tpu_custom_call.1
= control target key start
LH: loop header
LB: loop body
LE: loop exit
PB: predicated region body
PF: predicated region fallthrough
CT: control target
= control target key end

     0   :  { %12 = vsyncpa [#allocation4], 0  ;;  %s645_s0 = inlined_call_operand.hbm [shape: f32[16,256], index: 0, kind: input, shape index: {}]   ;;  %s646_s1 = inlined_call_operand.hbm [shape: f32[256,256], index: 1, kind: input, shape index: {}]   ;;  %s647_s2 = inlined_call_operand.vmem [shape: f32[1,256], index: 2, kind: input, shape index: {}]   ;;  %s648_s3 = inlined_call_operand.hbm [shape: f32[256,256], index: 3, kind: input, shape index: {}]   ;;  %s649_s4 = inlined_call_operand.vmem [shape: f32[1,256], index: 4, kind: input, shape index: {}]   ;;  %s650_s5 = inlined_call_operand.hbm [shape: f32[16,256], index: 5, kind: output, shape index: {0}]   ;;  %s651_s6 = inlined_call_operand.hbm [shape: f32[16,256], index: 6, kind: output, shape index: {1}]  }
   0x1   :  { %13 = vsyncpa [#allocation7], 0 }
   0x2   :  { %14 = vsyncpa [#allocation5], 0 }
   0x3   :  { %15 = vsyncpa [#allocation11], 0  ;;  %s567_s21 = smov [#allocation6]   ;;  %s568_s23 = smov [#allocation3]  }
   0x4   :  { %s33_s22 = sshll.u32 %s567_s21, 4  ;;  %s21_s24 = sshll.u32 %s568_s23, 4  ;;  %s34_s22 = int_to_ptr.vmem [resolvable:$true] %s33_s22  ;;  %s22_s24 = int_to_ptr.vmem [resolvable:$true] %s21_s24 }
   0x5   :  { %s467_s25 = scalar_lea.vmem %s34_s22, 8192  ;;  %p472_p1 = scmp.lt.s32.totalorder %s34_s22, %s34_s22 }
   0x6   :  { %p468_p0 = scmp.ne.s32.totalorder %s34_s22, %s467_s25  ;;  %p473_p2 = scmp.lt.s32.totalorder %s467_s25, %s467_s25 }
   0x8   :  { %p474_p3 = por %p473_p2, %p472_p1 }
   0xa   :  { %p475_p4 = pnand %p474_p3, %p468_p0 }
   0xc   :  { %478 = shalt.err (!%p475_p4)
}
   0xd   :  { %s569_s26 = smov 256   ;;  %s570_s27 = smov 16  }
   0xe   :  { %39 = dma.hbm_to_vmem [thread:$0]  %s646_s1, 8192, %s34_s22, [#allocation7], %s569_s26, %s569_s26, %s570_s27  }
   0xf   :  { %s487_s30 = scalar_lea.vmem %s22_s24, 512  ;;  %p492_p6 = scmp.lt.s32.totalorder %s22_s24, %s22_s24 }
  0x10   :  { %p488_p5 = scmp.ne.s32.totalorder %s22_s24, %s487_s30  ;;  %p493_p7 = scmp.lt.s32.totalorder %s487_s30, %s487_s30 }
  0x12   :  { %p494_p8 = por %p493_p7, %p492_p6 }
  0x14   :  { %p495_p9 = pnand %p494_p8, %p488_p5 }
  0x16   :  { %498 = shalt.err (!%p495_p9)
}
  0x17   :  { %27 = dma.hbm_to_vmem [thread:$0]  %s645_s0, 512, %s22_s24, [#allocation4], %s569_s26, %s569_s26, %s570_s27  }
  0x18   :  { %s571_s9 = smov [#allocation8]  }
  0x19   :  { %s47_s10 = sshll.u32 %s571_s9, 4  ;;  %s48_s10 = int_to_ptr.vmem [resolvable:$true] %s47_s10 }
  0x1a   :  { %s507_s11 = scalar_lea.vmem %s48_s10, 8192  ;;  %p512_p11 = scmp.lt.s32.totalorder %s48_s10, %s48_s10 }
  0x1b   :  { %p508_p10 = scmp.ne.s32.totalorder %s48_s10, %s507_s11  ;;  %p513_p12 = scmp.lt.s32.totalorder %s507_s11, %s507_s11 }
  0x1d   :  { %p514_p13 = por %p513_p12, %p512_p11 }
  0x1f   :  { %p515_p0 = pnand %p514_p13, %p508_p10 }
  0x21   :  { %518 = shalt.err (!%p515_p0)
}
  0x22   :  { %53 = dma.hbm_to_vmem [thread:$0]  %s648_s3, 8192, %s48_s10, [#allocation7], %s569_s26, %s569_s26, %s570_s27  }
  0x23   :  { %559 = dma.done.wait [#allocation4], 512  }
  0x24   :  { %560 = vsyncadd [#allocation4], 4294966784 }
  0x25   :  { %561 = dma.done.wait [#allocation7], 16384  }
  0x26   :  { %562 = vsyncadd [#allocation7], 4294950912  ;;  %v108_v0 = vld [vmem:[#allocation6 + $0xf8] sm:$0xff]  ;;  %v107_v1 = vld [vmem:[#allocation6 + $0xf0] sm:$0xff] }
  0x27   :  { %v106_v2 = vld [vmem:[#allocation6 + $0xe8] sm:$0xff]  ;;  %153 = vmatprep.subr.mxu0 %v108_v0  ;;  %v105_v3 = vld [vmem:[#allocation6 + $0xe0] sm:$0xff]  ;;  %v104_v4 = vld [vmem:[#allocation6 + $0xd8] sm:$0xff] }
  0x28   :  { %154 = vmatpush1.msra.mxu0 %v107_v1  ;;  %v103_v5 = vld [vmem:[#allocation6 + $0xd0] sm:$0xff]  ;;  %v102_v6 = vld [vmem:[#allocation6 + $0xc8] sm:$0xff]  ;;  %v101_v7 = vld [vmem:[#allocation6 + $0xc0] sm:$0xff] }
  0x29   :  { %155 = vmatprep.subr.mxu0 %v106_v2  ;;  %v100_v8 = vld [vmem:[#allocation6 + $0xb8] sm:$0xff]  ;;  %v99_v9 = vld [vmem:[#allocation6 + $0xb0] sm:$0xff]  ;;  %v98_v10 = vld [vmem:[#allocation6 + $0xa8] sm:$0xff] }
  0x2a   :  { %156 = vmatpush1.msra.mxu0 %v105_v3  ;;  %v97_v11 = vld [vmem:[#allocation6 + $0xa0] sm:$0xff]  ;;  %v96_v12 = vld [vmem:[#allocation6 + $0x98] sm:$0xff]  ;;  %v95_v13 = vld [vmem:[#allocation6 + $0x90] sm:$0xff] }
  0x2b   :  { %157 = vmatprep.subr.mxu0 %v104_v4  ;;  %v94_v14 = vld [vmem:[#allocation6 + $0x88] sm:$0xff]  ;;  %v93_v15 = vld [vmem:[#allocation6 + $0x80] sm:$0xff]  ;;  %v92_v16 = vld [vmem:[#allocation6 + $0x78] sm:$0xff] }
  0x2c   :  { %158 = vmatpush1.msra.mxu0 %v103_v5  ;;  %v91_v17 = vld [vmem:[#allocation6 + $0x70] sm:$0xff]  ;;  %v90_v18 = vld [vmem:[#allocation6 + $0x68] sm:$0xff]  ;;  %v89_v19 = vld [vmem:[#allocation6 + $0x60] sm:$0xff] }
  0x2d   :  { %159 = vmatprep.subr.mxu0 %v102_v6  ;;  %v88_v20 = vld [vmem:[#allocation6 + $0x58] sm:$0xff]  ;;  %v87_v21 = vld [vmem:[#allocation6 + $0x50] sm:$0xff]  ;;  %v86_v22 = vld [vmem:[#allocation6 + $0x48] sm:$0xff] }
  0x2e   :  { %160 = vmatpush1.msra.mxu0 %v101_v7  ;;  %v85_v23 = vld [vmem:[#allocation6 + $0x40] sm:$0xff]  ;;  %v74_v24 = vld [vmem:[#allocation3 + $0x8] sm:$0xff]  ;;  %v84_v25 = vld [vmem:[#allocation6 + $0x38] sm:$0xff] }
  0x2f   :  { %161 = vmatprep.subr.mxu0 %v100_v8  ;;  %v83_v26 = vld [vmem:[#allocation6 + $0x30] sm:$0xff]  ;;  %217 = vmatprep.mubr.f32.mxu0 %v74_v24  ;;  %v273_v27 = vld [vmem:[#allocation8 + $0xf8] sm:$0xff]  ;;  %v271_v29 = vld [vmem:[#allocation8 + $0xe8] sm:$0xff] }
  0x30   :  { %162 = vmatpush1.msra.mxu0 %v99_v9  ;;  %306 = vmatprep.subr.mxu1 %v273_v27  ;;  %v272_v28 = vld [vmem:[#allocation8 + $0xf0] sm:$0xff]  ;;  %v270_v30 = vld [vmem:[#allocation8 + $0xe0] sm:$0xff]  ;;  %v82_v31 = vld [vmem:[#allocation6 + $0x28] sm:$0xff] }
  0x31   :  { %163 = vmatprep.subr.mxu0 %v98_v10  ;;  %307 = vmatpush1.msra.mxu1 %v272_v28  ;;  %v269_v32 = vld [vmem:[#allocation8 + $0xd8] sm:$0xff]  ;;  %v81_v33 = vld [vmem:[#allocation6 + $0x20] sm:$0xff]  ;;  %v268_v34 = vld [vmem:[#allocation8 + $0xd0] sm:$0xff] }
  0x32   :  { %164 = vmatpush1.msra.mxu0 %v97_v11  ;;  %308 = vmatprep.subr.mxu1 %v271_v29  ;;  %v80_v35 = vld [vmem:[#allocation6 + $0x18] sm:$0xff]  ;;  %v267_v36 = vld [vmem:[#allocation8 + $0xc8] sm:$0xff]  ;;  %v79_v37 = vld [vmem:[#allocation6 + $0x10] sm:$0xff] }
  0x33   :  { %165 = vmatprep.subr.mxu0 %v96_v12  ;;  %309 = vmatpush1.msra.mxu1 %v270_v30  ;;  %v266_v38 = vld [vmem:[#allocation8 + $0xc0] sm:$0xff]  ;;  %v78_v39 = vld [vmem:[#allocation6 + $0x8] sm:$0xff]  ;;  %v265_v40 = vld [vmem:[#allocation8 + $0xb8] sm:$0xff] }
  0x34   :  { %166 = vmatpush1.msra.mxu0 %v95_v13  ;;  %310 = vmatprep.subr.mxu1 %v269_v32  ;;  %v77_v41 = vld [vmem:[#allocation6] sm:$0xff]  ;;  %v264_v42 = vld [vmem:[#allocation8 + $0xb0] sm:$0xff]  ;;  %v140_v43 = vld [vmem:[#allocation6 + $0x1f8] sm:$0xff] }
  0x35   :  { %167 = vmatprep.subr.mxu0 %v94_v14  ;;  %311 = vmatpush1.msra.mxu1 %v268_v34  ;;  %v263_v44 = vld [vmem:[#allocation8 + $0xa8] sm:$0xff]  ;;  %v139_v45 = vld [vmem:[#allocation6 + $0x1f0] sm:$0xff]  ;;  %v262_v46 = vld [vmem:[#allocation8 + $0xa0] sm:$0xff] }
  0x36   :  { %168 = vmatpush1.msra.mxu0 %v93_v15  ;;  %312 = vmatprep.subr.mxu1 %v267_v36  ;;  %v138_v47 = vld [vmem:[#allocation6 + $0x1e8] sm:$0xff]  ;;  %v261_v48 = vld [vmem:[#allocation8 + $0x98] sm:$0xff]  ;;  %v137_v49 = vld [vmem:[#allocation6 + $0x1e0] sm:$0xff] }
  0x37   :  { %169 = vmatprep.subr.mxu0 %v92_v16  ;;  %313 = vmatpush1.msra.mxu1 %v266_v38  ;;  %v260_v50 = vld [vmem:[#allocation8 + $0x90] sm:$0xff]  ;;  %v136_v51 = vld [vmem:[#allocation6 + $0x1d8] sm:$0xff]  ;;  %v259_v52 = vld [vmem:[#allocation8 + $0x88] sm:$0xff] }
  0x38   :  { %170 = vmatpush1.msra.mxu0 %v91_v17  ;;  %314 = vmatprep.subr.mxu1 %v265_v40  ;;  %v135_v53 = vld [vmem:[#allocation6 + $0x1d0] sm:$0xff]  ;;  %v258_v54 = vld [vmem:[#allocation8 + $0x80] sm:$0xff]  ;;  %v134_v55 = vld [vmem:[#allocation6 + $0x1c8] sm:$0xff] }
  0x39   :  { %171 = vmatprep.subr.mxu0 %v90_v18  ;;  %315 = vmatpush1.msra.mxu1 %v264_v42  ;;  %v257_v56 = vld [vmem:[#allocation8 + $0x78] sm:$0xff]  ;;  %v133_v57 = vld [vmem:[#allocation6 + $0x1c0] sm:$0xff]  ;;  %v256_v58 = vld [vmem:[#allocation8 + $0x70] sm:$0xff] }
  0x3a   :  { %172 = vmatpush1.msra.mxu0 %v89_v19  ;;  %316 = vmatprep.subr.mxu1 %v263_v44  ;;  %v132_v59 = vld [vmem:[#allocation6 + $0x1b8] sm:$0xff]  ;;  %v255_v60 = vld [vmem:[#allocation8 + $0x68] sm:$0xff]  ;;  %v131_v61 = vld [vmem:[#allocation6 + $0x1b0] sm:$0xff] }
  0x3b   :  { %173 = vmatprep.subr.mxu0 %v88_v20  ;;  %317 = vmatpush1.msra.mxu1 %v262_v46  ;;  %v254_v62 = vld [vmem:[#allocation8 + $0x60] sm:$0xff]  ;;  %v130_v63 = vld [vmem:[#allocation6 + $0x1a8] sm:$0xff]  ;;  %v253_v0 = vld [vmem:[#allocation8 + $0x58] sm:$0xff] }
  0x3c   :  { %174 = vmatpush1.msra.mxu0 %v87_v21  ;;  %318 = vmatprep.subr.mxu1 %v261_v48  ;;  %v129_v1 = vld [vmem:[#allocation6 + $0x1a0] sm:$0xff]  ;;  %v252_v2 = vld [vmem:[#allocation8 + $0x50] sm:$0xff]  ;;  %v128_v3 = vld [vmem:[#allocation6 + $0x198] sm:$0xff] }
  0x3d   :  { %175 = vmatprep.subr.mxu0 %v86_v22  ;;  %319 = vmatpush1.msra.mxu1 %v260_v50  ;;  %v251_v4 = vld [vmem:[#allocation8 + $0x48] sm:$0xff]  ;;  %v127_v5 = vld [vmem:[#allocation6 + $0x190] sm:$0xff]  ;;  %v250_v6 = vld [vmem:[#allocation8 + $0x40] sm:$0xff] }
  0x3e   :  { %176 = vmatpush1.msra.mxu0 %v85_v23  ;;  %320 = vmatprep.subr.mxu1 %v259_v52  ;;  %v126_v7 = vld [vmem:[#allocation6 + $0x188] sm:$0xff]  ;;  %v249_v8 = vld [vmem:[#allocation8 + $0x38] sm:$0xff]  ;;  %v125_v9 = vld [vmem:[#allocation6 + $0x180] sm:$0xff] }
  0x3f   :  { %177 = vmatprep.subr.mxu0 %v84_v25  ;;  %321 = vmatpush1.msra.mxu1 %v258_v54  ;;  %v248_v10 = vld [vmem:[#allocation8 + $0x30] sm:$0xff]  ;;  %v124_v11 = vld [vmem:[#allocation6 + $0x178] sm:$0xff]  ;;  %v247_v12 = vld [vmem:[#allocation8 + $0x28] sm:$0xff] }
  0x40   :  { %178 = vmatpush1.msra.mxu0 %v83_v26  ;;  %322 = vmatprep.subr.mxu1 %v257_v56  ;;  %v123_v13 = vld [vmem:[#allocation6 + $0x170] sm:$0xff]  ;;  %v246_v14 = vld [vmem:[#allocation8 + $0x20] sm:$0xff]  ;;  %v122_v15 = vld [vmem:[#allocation6 + $0x168] sm:$0xff] }
  0x41   :  { %179 = vmatprep.subr.mxu0 %v82_v31  ;;  %323 = vmatpush1.msra.mxu1 %v256_v58  ;;  %v245_v16 = vld [vmem:[#allocation8 + $0x18] sm:$0xff]  ;;  %v121_v17 = vld [vmem:[#allocation6 + $0x160] sm:$0xff]  ;;  %v244_v18 = vld [vmem:[#allocation8 + $0x10] sm:$0xff] }
  0x42   :  { %180 = vmatpush1.msra.mxu0 %v81_v33  ;;  %324 = vmatprep.subr.mxu1 %v255_v60  ;;  %v120_v19 = vld [vmem:[#allocation6 + $0x158] sm:$0xff]  ;;  %v243_v20 = vld [vmem:[#allocation8 + $0x8] sm:$0xff]  ;;  %v119_v21 = vld [vmem:[#allocation6 + $0x150] sm:$0xff] }
  0x43   :  { %181 = vmatprep.subr.mxu0 %v80_v35  ;;  %325 = vmatpush1.msra.mxu1 %v254_v62  ;;  %v242_v22 = vld [vmem:[#allocation8] sm:$0xff]  ;;  %v118_v23 = vld [vmem:[#allocation6 + $0x148] sm:$0xff]  ;;  %v305_v24 = vld [vmem:[#allocation8 + $0x1f8] sm:$0xff] }
  0x44   :  { %182 = vmatpush1.msra.mxu0 %v79_v37  ;;  %326 = vmatprep.subr.mxu1 %v253_v0  ;;  %v117_v25 = vld [vmem:[#allocation6 + $0x140] sm:$0xff]  ;;  %v304_v26 = vld [vmem:[#allocation8 + $0x1f0] sm:$0xff]  ;;  %v116_v27 = vld [vmem:[#allocation6 + $0x138] sm:$0xff] }
  0x45   :  { %183 = vmatprep.subr.mxu0 %v78_v39  ;;  %327 = vmatpush1.msra.mxu1 %v252_v2  ;;  %v303_v28 = vld [vmem:[#allocation8 + $0x1e8] sm:$0xff]  ;;  %v115_v29 = vld [vmem:[#allocation6 + $0x130] sm:$0xff]  ;;  %v302_v30 = vld [vmem:[#allocation8 + $0x1e0] sm:$0xff] }
  0x46   :  { %184 = vmatpush1.msra.mxu0 %v77_v41  ;;  %328 = vmatprep.subr.mxu1 %v251_v4  ;;  %v114_v31 = vld [vmem:[#allocation6 + $0x128] sm:$0xff]  ;;  %v301_v32 = vld [vmem:[#allocation8 + $0x1d8] sm:$0xff]  ;;  %v113_v33 = vld [vmem:[#allocation6 + $0x120] sm:$0xff]  ;;  %v143_v4 = vlaneseq }
  0x47   :  { %185 = vmatprep.subr.mxu0 %v140_v43  ;;  %329 = vmatpush1.msra.mxu1 %v250_v6  ;;  %v300_v34 = vld [vmem:[#allocation8 + $0x1d0] sm:$0xff]  ;;  %v112_v35 = vld [vmem:[#allocation6 + $0x118] sm:$0xff]  ;;  %v299_v36 = vld [vmem:[#allocation8 + $0x1c8] sm:$0xff] }
  0x48   :  { %186 = vmatpush2.msra.mxu0 %v139_v45  ;;  %330 = vmatprep.subr.mxu1 %v249_v8  ;;  %v111_v37 = vld [vmem:[#allocation6 + $0x110] sm:$0xff]  ;;  %v298_v38 = vld [vmem:[#allocation8 + $0x1c0] sm:$0xff]  ;;  %v110_v39 = vld [vmem:[#allocation6 + $0x108] sm:$0xff] }
  0x49   :  { %187 = vmatprep.subr.mxu0 %v138_v47  ;;  %331 = vmatpush1.msra.mxu1 %v248_v10  ;;  %v297_v40 = vld [vmem:[#allocation8 + $0x1b8] sm:$0xff]  ;;  %v109_v41 = vld [vmem:[#allocation6 + $0x100] sm:$0xff]  ;;  %v296_v42 = vld [vmem:[#allocation8 + $0x1b0] sm:$0xff] }
  0x4a   :  { %188 = vmatpush2.msra.mxu0 %v137_v49  ;;  %332 = vmatprep.subr.mxu1 %v247_v12  ;;  %v73_v43 = vld [vmem:[#allocation3] sm:$0xff]  ;;  %v295_v44 = vld [vmem:[#allocation8 + $0x1a8] sm:$0xff]  ;;  %v76_v45 = vld [vmem:[#allocation3 + $0x18] sm:$0xff] }
  0x4b   :  { %189 = vmatprep.subr.mxu0 %v136_v51  ;;  %333 = vmatpush1.msra.mxu1 %v246_v14  ;;  %v294_v46 = vld [vmem:[#allocation8 + $0x1a0] sm:$0xff]  ;;  %v293_v47 = vld [vmem:[#allocation8 + $0x198] sm:$0xff]  ;;  %v292_v48 = vld [vmem:[#allocation8 + $0x190] sm:$0xff] }
  0x4c   :  { %190 = vmatpush2.msra.mxu0 %v135_v53  ;;  %334 = vmatprep.subr.mxu1 %v245_v16  ;;  %v75_v49 = vld [vmem:[#allocation3 + $0x10] sm:$0xff]  ;;  %v291_v50 = vld [vmem:[#allocation8 + $0x188] sm:$0xff]  ;;  %v290_v51 = vld [vmem:[#allocation8 + $0x180] sm:$0xff] }
  0x4d   :  { %191 = vmatprep.subr.mxu0 %v134_v55  ;;  %335 = vmatpush1.msra.mxu1 %v244_v18  ;;  %v289_v52 = vld [vmem:[#allocation8 + $0x178] sm:$0xff]  ;;  %v288_v53 = vld [vmem:[#allocation8 + $0x170] sm:$0xff]  ;;  %v287_v54 = vld [vmem:[#allocation8 + $0x168] sm:$0xff] }
  0x4e   :  { %192 = vmatpush2.msra.mxu0 %v133_v57  ;;  %336 = vmatprep.subr.mxu1 %v243_v20  ;;  %v286_v55 = vld [vmem:[#allocation8 + $0x160] sm:$0xff]  ;;  %v285_v56 = vld [vmem:[#allocation8 + $0x158] sm:$0xff]  ;;  %v284_v57 = vld [vmem:[#allocation8 + $0x150] sm:$0xff] }
  0x4f   :  { %193 = vmatprep.subr.mxu0 %v132_v59  ;;  %337 = vmatpush1.msra.mxu1 %v242_v22  ;;  %v283_v58 = vld [vmem:[#allocation8 + $0x148] sm:$0xff]  ;;  %v282_v59 = vld [vmem:[#allocation8 + $0x140] sm:$0xff]  ;;  %v281_v60 = vld [vmem:[#allocation8 + $0x138] sm:$0xff] }
  0x50   :  { %194 = vmatpush2.msra.mxu0 %v131_v61  ;;  %338 = vmatprep.subr.mxu1 %v305_v24  ;;  %v280_v61 = vld [vmem:[#allocation8 + $0x130] sm:$0xff]  ;;  %v279_v62 = vld [vmem:[#allocation8 + $0x128] sm:$0xff]  ;;  %v277_v0 = vld [vmem:[#allocation8 + $0x118] sm:$0xff] }
  0x51   :  { %195 = vmatprep.subr.mxu0 %v130_v63  ;;  %339 = vmatpush2.msra.mxu1 %v304_v26  ;;  %v278_v63 = vld [vmem:[#allocation8 + $0x120] sm:$0xff]  ;;  %v275_v2 = vld [vmem:[#allocation8 + $0x108] sm:$0xff] }
  0x52   :  { %196 = vmatpush2.msra.mxu0 %v129_v1  ;;  %340 = vmatprep.subr.mxu1 %v303_v28  ;;  %v276_v1 = vld [vmem:[#allocation8 + $0x110] sm:$0xff] }
  0x53   :  { %197 = vmatprep.subr.mxu0 %v128_v3  ;;  %341 = vmatpush2.msra.mxu1 %v302_v30  ;;  %v274_v3 = vld [vmem:[#allocation8 + $0x100] sm:$0xff] }
  0x54   :  { %198 = vmatpush2.msra.mxu0 %v127_v5  ;;  %342 = vmatprep.subr.mxu1 %v301_v32  ;;  %v144_v5 = vshrl.u32 %v143_v4, 7 }
  0x55   :  { %199 = vmatprep.subr.mxu0 %v126_v7  ;;  %343 = vmatpush2.msra.mxu1 %v300_v34  ;;  %v141_v7 = vld [vmem:[%s647_s2] sm:$0x3]  ;;  %s572_s2 = smov [#allocation9]  }
  0x56   :  { %200 = vmatpush2.msra.mxu0 %v125_v9  ;;  %344 = vmatprep.subr.mxu1 %v299_v36  ;;  %v145_v6 = vsub.s32 0, %v144_v5  ;;  %v149_v8 = vsub.s32 1, %v144_v5  ;;  %s423_s13 = sshll.u32 %s572_s2, 4  ;;  %s424_s13 = int_to_ptr.vmem [resolvable:$true] %s423_s13 }
  0x57   :  { %201 = vmatprep.subr.mxu0 %v124_v11  ;;  %345 = vmatpush2.msra.mxu1 %v298_v38  ;;  %s519_s14 = scalar_lea.vmem %s424_s13, 512  ;;  %p524_p2 = scmp.lt.s32.totalorder %s424_s13, %s424_s13 }
  0x58   :  { %202 = vmatpush2.msra.mxu0 %v123_v13  ;;  %346 = vmatprep.subr.mxu1 %v297_v40  ;;  %v146_v9 = vrot.slane %v141_v7, %v145_v6  ;;  %v150_v10 = vrot.slane %v141_v7, %v149_v8  ;;  %p520_p1 = scmp.ne.s32.totalorder %s424_s13, %s519_s14  ;;  %p525_p3 = scmp.lt.s32.totalorder %s519_s14, %s519_s14 }
  0x59   :  { %203 = vmatprep.subr.mxu0 %v122_v15  ;;  %347 = vmatpush2.msra.mxu1 %v296_v42 }
  0x5a   :  { %204 = vmatpush2.msra.mxu0 %v121_v17  ;;  %348 = vmatprep.subr.mxu1 %v295_v44  ;;  %p526_p4 = por %p525_p3, %p524_p2 }
  0x5b   :  { %205 = vmatprep.subr.mxu0 %v120_v19  ;;  %349 = vmatpush2.msra.mxu1 %v294_v46 }
  0x5c   :  { %206 = vmatpush2.msra.mxu0 %v119_v21  ;;  %350 = vmatprep.subr.mxu1 %v293_v47  ;;  %p527_p5 = pnand %p526_p4, %p520_p1 }
  0x5d   :  { %207 = vmatprep.subr.mxu0 %v118_v23  ;;  %351 = vmatpush2.msra.mxu1 %v292_v48 }
  0x5e   :  { %208 = vmatpush2.msra.mxu0 %v117_v25  ;;  %352 = vmatprep.subr.mxu1 %v291_v50 }
  0x5f   :  { %209 = vmatprep.subr.mxu0 %v116_v27  ;;  %353 = vmatpush2.msra.mxu1 %v290_v51 }
  0x60   :  { %210 = vmatpush2.msra.mxu0 %v115_v29  ;;  %354 = vmatprep.subr.mxu1 %v289_v52 }
  0x61   :  { %211 = vmatprep.subr.mxu0 %v114_v31  ;;  %355 = vmatpush2.msra.mxu1 %v288_v53 }
  0x62   :  { %212 = vmatpush2.msra.mxu0 %v113_v33  ;;  %356 = vmatprep.subr.mxu1 %v287_v54 }
  0x63   :  { %213 = vmatprep.subr.mxu0 %v112_v35  ;;  %357 = vmatpush2.msra.mxu1 %v286_v55 }
  0x64   :  { %214 = vmatpush2.msra.mxu0 %v111_v37  ;;  %358 = vmatprep.subr.mxu1 %v285_v56 }
  0x65   :  { %215 = vmatprep.subr.mxu0 %v110_v39  ;;  %359 = vmatpush2.msra.mxu1 %v284_v57 }
  0x66   :  { %216 = vmatpush2.msra.mxu0 %v109_v41  ;;  %360 = vmatprep.subr.mxu1 %v283_v58 }
  0x67   :  { %218 = vmatmul.mubr.f32.vlgmr.msra.gmra.mxu0 %v73_v43  ;;  %361 = vmatpush2.msra.mxu1 %v282_v59 }
  0x68   :  { %223 = vmatprep.mubr.f32.mxu0 %v76_v45  ;;  %362 = vmatprep.subr.mxu1 %v281_v60 }
  0x69   :  { %363 = vmatpush2.msra.mxu1 %v280_v61 }
  0x6a   :  { %364 = vmatprep.subr.mxu1 %v279_v62 }
  0x6b   :  { %224 = vmatmul.mubr.f32.gmra.mxu0 %v75_v49  ;;  %365 = vmatpush2.msra.mxu1 %v278_v63 }
  0x6c   :  { %366 = vmatprep.subr.mxu1 %v277_v0 }
  0x6d   :  { %367 = vmatpush2.msra.mxu1 %v276_v1 }
  0x6e   :  { %368 = vmatprep.subr.mxu1 %v275_v2 }
  0x6f   :  { %369 = vmatpush2.msra.mxu1 %v274_v3 }
 0x127   :  { %v219_v11 = vpop.f32.mrf.mxu0 }
 0x128   :  { %v220_v12 = vadd.f32 %v219_v11, %v146_v9 }
 0x129   :  { %v221_v13 = vpop.f32.mrf.mxu0 }
 0x12a   :  { %v230_v14 = vmax.f32 %v220_v12, 0.0  ;;  %v222_v15 = vadd.f32 %v221_v13, %v150_v10 }
 0x12b   :  { %v225_v16 = vpop.f32.mrf.mxu0 }
 0x12c   :  { %234 = vst [vmem:[#allocation9] sm:$0xff] %v230_v14  ;;  %v231_v17 = vmax.f32 %v222_v15, 0.0  ;;  %v226_v18 = vadd.f32 %v225_v16, %v146_v9 }
 0x12d   :  { %v227_v19 = vpop.f32.mrf.mxu0 }
 0x12e   :  { %235 = vst [vmem:[#allocation9 + $0x8] sm:$0xff] %v231_v17  ;;  %v232_v20 = vmax.f32 %v226_v18, 0.0  ;;  %v228_v21 = vadd.f32 %v227_v19, %v150_v10  ;;  %370 = vmatprep.mubr.f32.mxu1 %v231_v17 }
 0x12f   :  { %371 = vmatmul.mubr.f32.vlgmr.msra.gmra.mxu1 %v230_v14 }
 0x130   :  { %236 = vst [vmem:[#allocation9 + $0x10] sm:$0xff] %v232_v20  ;;  %v233_v22 = vmax.f32 %v228_v21, 0.0 }
 0x132   :  { %237 = vst [vmem:[#allocation9 + $0x18] sm:$0xff] %v233_v22  ;;  %376 = vmatprep.mubr.f32.mxu1 %v233_v22 }
 0x133   :  { %377 = vmatmul.mubr.f32.gmra.mxu1 %v232_v20 }
 0x134   :  { %530 = shalt.err (!%p527_p5)
}
 0x135   :  { %429 = dma.vmem_to_hbm [thread:$0]  %s424_s13, 512, %s650_s5, [#allocation5], %s569_s26, %s569_s26, %s570_s27  }
 0x136   :  { %v398_v23 = vld [vmem:[%s649_s4] sm:$0x3]  ;;  %s573_s19 = smov [#allocation10]  }
 0x137   :  { %v403_v24 = vrot.slane %v398_v23, %v145_v6  ;;  %v407_v25 = vrot.slane %v398_v23, %v149_v8  ;;  %s435_s20 = sshll.u32 %s573_s19, 4  ;;  %s436_s20 = int_to_ptr.vmem [resolvable:$true] %s435_s20 }
 0x138   :  { %s539_s5 = scalar_lea.vmem %s436_s20, 512  ;;  %p544_p7 = scmp.lt.s32.totalorder %s436_s20, %s436_s20 }
 0x139   :  { %p540_p6 = scmp.ne.s32.totalorder %s436_s20, %s539_s5  ;;  %p545_p8 = scmp.lt.s32.totalorder %s539_s5, %s539_s5 }
 0x13b   :  { %p546_p9 = por %p545_p8, %p544_p7 }
 0x13d   :  { %p547_p10 = pnand %p546_p9, %p540_p6 }
 0x1ef   :  { %v372_v26 = vpop.f32.mrf.mxu1 }
 0x1f0   :  { %v410_v27 = vadd.f32 %v403_v24, %v372_v26 }
 0x1f1   :  { %v374_v28 = vpop.f32.mrf.mxu1 }
 0x1f2   :  { %414 = vst [vmem:[#allocation10] sm:$0xff] %v410_v27  ;;  %v411_v29 = vadd.f32 %v407_v25, %v374_v28 }
 0x1f3   :  { %v378_v30 = vpop.f32.mrf.mxu1 }
 0x1f4   :  { %415 = vst [vmem:[#allocation10 + $0x8] sm:$0xff] %v411_v29  ;;  %v412_v31 = vadd.f32 %v403_v24, %v378_v30 }
 0x1f5   :  { %v380_v32 = vpop.f32.mrf.mxu1 }
 0x1f6   :  { %416 = vst [vmem:[#allocation10 + $0x10] sm:$0xff] %v412_v31  ;;  %v413_v33 = vadd.f32 %v407_v25, %v380_v32 }
 0x1f8   :  { %417 = vst [vmem:[#allocation10 + $0x18] sm:$0xff] %v413_v33 }
 0x1f9   :  { %550 = shalt.err (!%p547_p10)
}
 0x1fa   :  { %441 = dma.vmem_to_hbm [thread:$0]  %s436_s20, 512, %s651_s6, [#allocation11], %s569_s26, %s569_s26, %s570_s27  }
 0x1fb   :  { %563 = dma.done.wait [#allocation5], 512  }
 0x1fc   :  { %564 = vsyncadd [#allocation5], 4294966784 }
 0x1fd   :  { %565 = dma.done.wait [#allocation11], 512  }
 0x1fe   :  { %566 = vsyncadd [#allocation11], 4294966784 }
 0x1ff   :  { %448 = vsyncpa [#allocation4], 1 }
 0x200   :  { %449 = vsyncpa [#allocation7], 1 }
 0x201   :  { %450 = vsyncpa [#allocation5], 1 }
 0x202   :  { %451 = vsyncpa [#allocation11], 1 }

</bundles_post_ra>
